<compile_context>
chip_gen: v6e
topology: v6e:2x2x1
jax: 0.10.0
libtpu: 0.0.40
codegen_flags: <defaults>
</compile_context>

<pallas_src>
import jax
import jax.numpy as jnp
from jax.experimental import pallas as pl
from jax.experimental.pallas import tpu as pltpu


def se_kernel(x_ref, w1t_ref, b1_ref, w2t_ref, b2_ref, o_ref):
    # x_ref: (Bt, C, HW)   w1t: (C, Ch)  b1: (1, Ch)  w2t: (Ch, C)  b2: (1, C)
    x = x_ref[...]

    # Squeeze: global average pool over the flattened spatial (lane) axis.
    # Accumulate in f32 without materializing a full-block f32 copy of x.
    pooled = jnp.mean(x, axis=-1, dtype=jnp.float32)                # (Bt, C)

    # Excitation MLP: Linear -> ReLU -> Linear -> Sigmoid.  Tiny matmuls;
    # MXU utilization is irrelevant — the kernel is HBM-bound on x.
    h = jnp.dot(pooled, w1t_ref[...], preferred_element_type=jnp.float32)
    h = jnp.maximum(h + b1_ref[...], 0.0)                           # (Bt, Ch)
    y = jnp.dot(h, w2t_ref[...], preferred_element_type=jnp.float32)
    y = jax.nn.sigmoid(y + b2_ref[...])                             # (Bt, C)

    # Scale: per-channel gate broadcast along lanes; cast the gate once and
    # multiply x in its native dtype (dense, unmasked store for HW % 128 == 0).
    gate = y.astype(x.dtype)                                        # (Bt, C)
    o_ref[...] = (x * gate[:, :, None]).astype(o_ref.dtype)


def _tpu_generation():
    try:
        kind = jax.devices()[0].device_kind.lower()
    except Exception:
        return "unknown"
    if "v7" in kind:
        return "v7x"
    if "v6" in kind:
        return "v6e"
    if "v5" in kind:
        return "v5e"
    return "unknown"


def _pick_bt(batch, bytes_per_batch, max_block_bytes, cores):
    """Pick the batch tile: largest block under the VMEM cap, then split only
    as far as needed for per-core pipelining, never below ~1 MiB blocks."""
    min_block_bytes = 1 << 20
    bt = max(1, min(batch, max_block_bytes // max(bytes_per_batch, 1)))

    # Aim for >= 2 grid steps per TensorCore so each core double-buffers.
    target_steps = 2 * cores
    while (pl.cdiv(batch, bt) < target_steps and bt > 1
           and (bt // 2) * bytes_per_batch >= min_block_bytes):
        bt = max(1, bt // 2)

    # v7x: keep the step count even so neither core idles for a whole block.
    if cores > 1:
        steps = pl.cdiv(batch, bt)
        if steps > 1 and steps % 2 == 1:
            for cand in range(bt - 1, 0, -1):
                if pl.cdiv(batch, cand) % 2 == 0:
                    bt = cand
                    break
    return bt


def se_layer(x, w1, b1, w2, b2):
    B, C, H, W = x.shape
    Ch = w1.shape[0]
    HW = H * W
    itemsize = jnp.dtype(x.dtype).itemsize

    # Free host-side layout plumbing: flatten spatial dims (NCHW contiguous),
    # pre-transpose the excitation weights, make biases 2-D rows.
    # Note: if H*W is not a multiple of 128 (e.g. 7*7=49) the stores are
    # partially masked; fixing that needs a free upstream layout change
    # (channels-last or padded HW) — an in-wrapper pad/transpose would cost an
    # extra HBM round trip, so we don't do it here.
    x_flat = x.reshape(B, C, HW)
    w1t = jnp.transpose(w1)            # (C, Ch)
    w2t = jnp.transpose(w2)            # (Ch, C)
    b1_2d = b1.reshape(1, Ch)
    b2_2d = b2.reshape(1, C)

    # Generation-aware block-size / VMEM policy.
    gen = _tpu_generation()
    if gen == "v7x":
        cores, max_block_bytes, vmem_cap = 2, 4 << 20, 32 << 20
        use_buffered3 = True           # 3.2 TB/s HBM -> hide DMA issue latency
    elif gen in ("v6e", "v5e"):
        cores, max_block_bytes, vmem_cap = 1, 8 << 20, 64 << 20
        use_buffered3 = False
    else:
        # Unknown chip: conservative (v7x-safe) caps, default double-buffering.
        cores, max_block_bytes, vmem_cap = 2, 4 << 20, 32 << 20
        use_buffered3 = False

    bytes_per_batch = C * HW * itemsize
    bt = _pick_bt(B, bytes_per_batch, max_block_bytes, cores)
    grid = (pl.cdiv(B, bt),)

    block_bytes = bt * bytes_per_batch
    weight_bytes = (2 * C * Ch + C + Ch) * 4
    in_bufs = 3 if use_buffered3 else 2
    vmem_needed = (in_bufs + 2) * block_bytes + weight_bytes + (2 << 20)
    vmem_limit = int(min(max(vmem_needed, 16 << 20), vmem_cap))

    cost = pl.CostEstimate(
        flops=2 * B * C * HW + 4 * B * C * Ch,      # pool + scale + tiny MLP
        transcendentals=B * C,                       # sigmoid
        bytes_accessed=2 * B * C * HW * itemsize + weight_bytes,
    )

    if use_buffered3:
        x_spec = pl.BlockSpec((bt, C, HW), lambda b: (b, 0, 0),
                              pipeline_mode=pl.Buffered(3))
    else:
        x_spec = pl.BlockSpec((bt, C, HW), lambda b: (b, 0, 0))

    out_flat = pl.pallas_call(
        se_kernel,
        out_shape=jax.ShapeDtypeStruct((B, C, HW), x.dtype),
        grid=grid,
        in_specs=[
            x_spec,
            pl.BlockSpec((C, Ch), lambda b: (0, 0)),
            pl.BlockSpec((1, Ch), lambda b: (0, 0)),
            pl.BlockSpec((Ch, C), lambda b: (0, 0)),
            pl.BlockSpec((1, C), lambda b: (0, 0)),
        ],
        out_specs=pl.BlockSpec((bt, C, HW), lambda b: (b, 0, 0)),
        compiler_params=pltpu.CompilerParams(
            dimension_semantics=("parallel",),
            vmem_limit_bytes=vmem_limit,
        ),
        cost_estimate=cost,
    )(x_flat, w1t, b1_2d, w2t, b2_2d)

    return out_flat.reshape(B, C, H, W)


def se_layer_ref(x, w1, b1, w2, b2):
    # Pure-JAX reference (mirrors the PyTorch module exactly).
    pooled = jnp.mean(x.astype(jnp.float32), axis=(2, 3))            # (B, C)
    h = jnp.maximum(pooled @ w1.T + b1, 0.0)                         # (B, Ch)
    y = jax.nn.sigmoid(h @ w2.T + b2)                                # (B, C)
    return (x.astype(jnp.float32) * y[:, :, None, None]).astype(x.dtype)


if __name__ == "__main__":
    B, C, H, W = 2, 32, 16, 16
    reduction = 16
    Ch = C // reduction  # hidden = 2

    key = jax.random.PRNGKey(0)
    kx, k1, k2, k3, k4 = jax.random.split(key, 5)

    x = jax.random.normal(kx, (B, C, H, W), dtype=jnp.float32)
    # Deterministic parameter init (matching nn.Linear shapes).
    w1 = jax.random.uniform(k1, (Ch, C), jnp.float32, -0.2, 0.2)
    b1 = jax.random.uniform(k2, (Ch,), jnp.float32, -0.2, 0.2)
    w2 = jax.random.uniform(k3, (C, Ch), jnp.float32, -0.5, 0.5)
    b2 = jax.random.uniform(k4, (C,), jnp.float32, -0.5, 0.5)

    out = se_layer(x, w1, b1, w2, b2)
    out = jax.block_until_ready(out)

    ref = se_layer_ref(x, w1, b1, w2, b2)
    assert out.shape == (B, C, H, W)
    assert jnp.allclose(out, ref, atol=1e-5, rtol=1e-5), "mismatch vs reference"

    print("KERNEL_OK")
</pallas_src>

<mosaic_0001>
module attributes {stable_mosaic.version = 11 : i64} {
  func.func @se_kernel(%arg0: i32, %arg1: memref<2x32x256xf32, #tpu.memory_space<vmem>>, %arg2: memref<32x2xf32, #tpu.memory_space<vmem>>, %arg3: memref<1x2xf32, #tpu.memory_space<vmem>>, %arg4: memref<2x32xf32, #tpu.memory_space<vmem>>, %arg5: memref<1x32xf32, #tpu.memory_space<vmem>>, %arg6: memref<2x32x256xf32, #tpu.memory_space<vmem>>) attributes {dimension_semantics = [#tpu.dimension_semantics<parallel>], iteration_bounds = array<i64: 1>, scalar_prefetch = 0 : i64, scratch_operands = 0 : i64, tpu.core_type = #tpu.core_type<tc>, window_params = [{transform_indices = @transform_0, window_bounds = array<i64: 2, 32, 256>}, {pipeline_mode = #tpu.pipeline_mode<synchronous>, transform_indices = @transform_1, window_bounds = array<i64: 32, 2>}, {pipeline_mode = #tpu.pipeline_mode<synchronous>, transform_indices = @transform_2, window_bounds = array<i64: 1, 2>}, {pipeline_mode = #tpu.pipeline_mode<synchronous>, transform_indices = @transform_3, window_bounds = array<i64: 2, 32>}, {pipeline_mode = #tpu.pipeline_mode<synchronous>, transform_indices = @transform_4, window_bounds = array<i64: 1, 32>}, {transform_indices = @transform_5, window_bounds = array<i64: 2, 32, 256>}]} {
    %c0 = arith.constant 0 : index
    %c0_0 = arith.constant 0 : index
    %c0_1 = arith.constant 0 : index
    %0 = vector.load %arg1[%c0, %c0_0, %c0_1] : memref<2x32x256xf32, #tpu.memory_space<vmem>>, vector<2x32x256xf32>
    %cst = arith.constant dense<0.000000e+00> : vector<2x32xf32>
    %1 = vector.multi_reduction <add>, %0, %cst [2] : vector<2x32x256xf32> to vector<2x32xf32>
    %cst_2 = arith.constant 2.560000e+02 : f32
    %2 = vector.broadcast %cst_2 : f32 to vector<2x32xf32>
    %3 = arith.divf %1, %2 : vector<2x32xf32>
    %c0_3 = arith.constant 0 : index
    %c0_4 = arith.constant 0 : index
    %4 = vector.load %arg2[%c0_3, %c0_4] : memref<32x2xf32, #tpu.memory_space<vmem>>, vector<32x2xf32>
    %cst_5 = arith.constant dense<0.000000e+00> : vector<2x2xf32>
    %5 = tpu.matmul %3, %4, %cst_5 {dimension_numbers = #tpu.dot_dimension_numbers<[1], [0], [0], [1], [0, 0, 1, 1], [], []>} : vector<2x32xf32>, vector<32x2xf32>, vector<2x2xf32> -> vector<2x2xf32>
    %c0_6 = arith.constant 0 : index
    %c0_7 = arith.constant 0 : index
    %6 = vector.load %arg3[%c0_6, %c0_7] : memref<1x2xf32, #tpu.memory_space<vmem>>, vector<1x2xf32>
    %7 = vector.broadcast %6 : vector<1x2xf32> to vector<2x2xf32>
    %8 = arith.addf %5, %7 : vector<2x2xf32>
    %cst_8 = arith.constant 0.000000e+00 : f32
    %9 = vector.broadcast %cst_8 : f32 to vector<2x2xf32>
    %10 = arith.maximumf %8, %9 : vector<2x2xf32>
    %c0_9 = arith.constant 0 : index
    %c0_10 = arith.constant 0 : index
    %11 = vector.load %arg4[%c0_9, %c0_10] : memref<2x32xf32, #tpu.memory_space<vmem>>, vector<2x32xf32>
    %cst_11 = arith.constant dense<0.000000e+00> : vector<2x32xf32>
    %12 = tpu.matmul %10, %11, %cst_11 {dimension_numbers = #tpu.dot_dimension_numbers<[1], [0], [0], [1], [0, 0, 1, 1], [], []>} : vector<2x2xf32>, vector<2x32xf32>, vector<2x32xf32> -> vector<2x32xf32>
    %c0_12 = arith.constant 0 : index
    %c0_13 = arith.constant 0 : index
    %13 = vector.load %arg5[%c0_12, %c0_13] : memref<1x32xf32, #tpu.memory_space<vmem>>, vector<1x32xf32>
    %14 = vector.broadcast %13 : vector<1x32xf32> to vector<2x32xf32>
    %15 = arith.addf %12, %14 : vector<2x32xf32>
    %16 = arith.negf %15 : vector<2x32xf32>
    %17 = math.exp %16 : vector<2x32xf32>
    %cst_14 = arith.constant 1.000000e+00 : f32
    %18 = vector.broadcast %cst_14 : f32 to vector<2x32xf32>
    %19 = arith.addf %18, %17 : vector<2x32xf32>
    %20 = arith.divf %18, %19 : vector<2x32xf32>
    %21 = vector.shape_cast %20 : vector<2x32xf32> to vector<2x32x1xf32>
    %22 = vector.broadcast %21 : vector<2x32x1xf32> to vector<2x32x256xf32>
    %23 = arith.mulf %0, %22 : vector<2x32x256xf32>
    %c0_15 = arith.constant 0 : index
    %c0_16 = arith.constant 0 : index
    %c0_17 = arith.constant 0 : index
    %24 = vector.load %arg6[%c0_15, %c0_16, %c0_17] : memref<2x32x256xf32, #tpu.memory_space<vmem>>, vector<2x32x256xf32>
    tpu.vector_store %arg6[%c0_15, %c0_16, %c0_17], %23 {strides = array<i32>} : memref<2x32x256xf32, #tpu.memory_space<vmem>>, vector<2x32x256xf32>,
    return
  }
  func.func @transform_0(%arg0: i32) -> (i32, i32, i32) {
    %c0_i32 = arith.constant 0 : i32
    %c0_i32_0 = arith.constant 0 : i32
    %c0_i32_1 = arith.constant 0 : i32
    return %arg0, %c0_i32, %c0_i32_0 : i32, i32, i32
  }
  func.func @transform_1(%arg0: i32) -> (i32, i32) {
    %c0_i32 = arith.constant 0 : i32
    %c0_i32_0 = arith.constant 0 : i32
    %c0_i32_1 = arith.constant 0 : i32
    return %c0_i32, %c0_i32_0 : i32, i32
  }
  func.func @transform_2(%arg0: i32) -> (i32, i32) {
    %c0_i32 = arith.constant 0 : i32
    %c0_i32_0 = arith.constant 0 : i32
    %c0_i32_1 = arith.constant 0 : i32
    return %c0_i32, %c0_i32_0 : i32, i32
  }
  func.func @transform_3(%arg0: i32) -> (i32, i32) {
    %c0_i32 = arith.constant 0 : i32
    %c0_i32_0 = arith.constant 0 : i32
    %c0_i32_1 = arith.constant 0 : i32
    return %c0_i32, %c0_i32_0 : i32, i32
  }
  func.func @transform_4(%arg0: i32) -> (i32, i32) {
    %c0_i32 = arith.constant 0 : i32
    %c0_i32_0 = arith.constant 0 : i32
    %c0_i32_1 = arith.constant 0 : i32
    return %c0_i32, %c0_i32_0 : i32, i32
  }
  func.func @transform_5(%arg0: i32) -> (i32, i32, i32) {
    %c0_i32 = arith.constant 0 : i32
    %c0_i32_0 = arith.constant 0 : i32
    %c0_i32_1 = arith.constant 0 : i32
    return %arg0, %c0_i32, %c0_i32_0 : i32, i32, i32
  }
}

</mosaic_0001>

<bundles_post_ra>
// kernel: tpu_custom_call.1
= control target key start
LH: loop header
LB: loop body
LE: loop exit
PB: predicated region body
PF: predicated region fallthrough
CT: control target
= control target key end

     0   :  { %10 = vsyncpa [#allocation3], 0  ;;  %s628_s0 = inlined_call_operand.hbm [shape: f32[2,32,256], index: 0, kind: input, shape index: {}]   ;;  %s629_s1 = inlined_call_operand.vmem [shape: f32[32,2], index: 1, kind: input, shape index: {}]   ;;  %s630_s2 = inlined_call_operand.vmem [shape: f32[1,2], index: 2, kind: input, shape index: {}]   ;;  %s631_s3 = inlined_call_operand.vmem [shape: f32[2,32], index: 3, kind: input, shape index: {}]   ;;  %s632_s4 = inlined_call_operand.vmem [shape: f32[1,32], index: 4, kind: input, shape index: {}]   ;;  %s633_s5 = inlined_call_operand.hbm [shape: f32[2,32,256], index: 5, kind: output, shape index: {}]  }
   0x1   :  { %11 = vsyncpa [#allocation4], 0  ;;  %s487_s18 = smov [#allocation2]  }
   0x2   :  { %s17_s19 = sshll.u32 %s487_s18, 4  ;;  %s18_s19 = int_to_ptr.vmem [resolvable:$true] %s17_s19 }
   0x3   :  { %s451_s20 = scalar_lea.vmem %s18_s19, 2048  ;;  %p456_p1 = scmp.lt.s32.totalorder %s18_s19, %s18_s19 }
   0x4   :  { %p452_p0 = scmp.ne.s32.totalorder %s18_s19, %s451_s20  ;;  %p457_p2 = scmp.lt.s32.totalorder %s451_s20, %s451_s20 }
   0x6   :  { %p458_p3 = por %p457_p2, %p456_p1 }
   0x8   :  { %p459_p4 = pnand %p458_p3, %p452_p0 }
   0xa   :  { %462 = shalt.err (!%p459_p4)
}
   0xb   :  { %s488_s21 = smov 256   ;;  %s489_s22 = smov 16  }
   0xc   :  { %23 = dma.hbm_to_vmem [thread:$0]  %s628_s0, 2048, %s18_s19, [#allocation3], %s488_s21, %s488_s21, %s489_s22  }
   0xd   :  { %483 = dma.done.wait [#allocation3], 2048  }
   0xe   :  { %484 = vsyncadd [#allocation3], 4294965248  ;;  %v529_v0 = vld [vmem:[#allocation2 + $0x40] sm:$0xff]  ;;  %v531_v1 = vld [vmem:[#allocation2 + $0x48] sm:$0xff]  ;;  %v490_v24 = vmov 0.0   ;;  %vm491_vm0 = vmmov 0   ;;  %v103_v29 = vlaneseq }
   0xf   :  { %v533_v2 = vld [vmem:[#allocation2] sm:$0xff]  ;;  %v63_v3 = vadd.f32 %v531_v1, %v529_v0  ;;  %v537_v4 = vld [vmem:[#allocation2 + $0x8] sm:$0xff]  ;;  %v539_v5 = vld [vmem:[#allocation2 + $0x50] sm:$0xff]  ;;  %417 = vmatprep.subr.mxu0 %v490_v24  ;;  %428 = vmatprep.subr.mxu1 %v490_v24  ;;  %vm114_vm1 = vcmask 130112   ;;  %vm121_vm2 = vcmask 195712   ;;  %vm128_vm3 = vcmask 261312  }
  0x10   :  { %v541_v6 = vld [vmem:[#allocation2 + $0x58] sm:$0xff]  ;;  %v51_v7 = vadd.f32 %v537_v4, %v533_v2  ;;  %v545_v8 = vld [vmem:[#allocation2 + $0x10] sm:$0xff]  ;;  %v553_v12 = vld [vmem:[#allocation2 + $0x60] sm:$0xff]  ;;  %425 = vmatprep.mubr.msk.f32.mxu0 %vm491_vm0, %v490_v24  ;;  %430 = vmatprep.mubr.msk.f32.mxu1 %vm491_vm0, %v490_v24  ;;  %v104_v31 = vand.u32 127, %v103_v29  ;;  %v589_v36 = vshrl.u32 %v103_v29, 7  ;;  %vm149_vm4 = vcmask 1041409  }
  0x11   :  { %v547_v9 = vld [vmem:[#allocation2 + $0x18] sm:$0xff]  ;;  %64 = vadd.xlane.f32.xlu1 %v63_v3  ;;  %v66_v10 = vadd.f32 %v541_v6, %v539_v5  ;;  %v555_v13 = vld [vmem:[#allocation2 + $0x68] sm:$0xff]  ;;  %v557_v14 = vld [vmem:[#allocation2 + $0x20] sm:$0xff]  ;;  %vm151_vm5 = vcmask 261120   ;;  %vm237_vm6 = vcmask 1041408   ;;  %vm233_vm7 = vcmask 15360  }
  0x12   :  { %52 = vadd.xlane.f32.xlu0 %v51_v7  ;;  %v54_v11 = vadd.f32 %v547_v9, %v545_v8  ;;  %v559_v15 = vld [vmem:[#allocation2 + $0x28] sm:$0xff]  ;;  %v69_v16 = vadd.f32 %v555_v13, %v553_v12  ;;  %v565_v18 = vld [vmem:[#allocation2 + $0x70] sm:$0xff]  ;;  %v567_v19 = vld [vmem:[#allocation2 + $0x78] sm:$0xff]  ;;  %v109_v33 = vadd.s32 4294967288, %v104_v31  ;;  %v116_v35 = vadd.s32 4294967280, %v104_v31 }
  0x13   :  { %v57_v17 = vadd.f32 %v559_v15, %v557_v14  ;;  %v569_v20 = vld [vmem:[#allocation2 + $0x30] sm:$0xff]  ;;  %v571_v21 = vld [vmem:[#allocation2 + $0x38] sm:$0xff]  ;;  %v72_v22 = vadd.f32 %v567_v19, %v565_v18  ;;  %v85_v27 = vld [vmem:[%s629_s1 + $0x8] sm:$0xff]  ;;  %v123_v40 = vadd.s32 4294967272, %v104_v31  ;;  %v107_v44 = vsub.s32 %v104_v31, %v589_v36 }
  0x14   :  { %v60_v23 = vadd.f32 %v571_v21, %v569_v20  ;;  %v87_v25 = vld [vmem:[%s629_s1 + $0x18] sm:$0xff]  ;;  %v86_v26 = vld [vmem:[%s629_s1 + $0x10] sm:$0xff]  ;;  %v84_v28 = vld [vmem:[%s629_s1] sm:$0xff]  ;;  %v112_v38 = vsub.s32 %v109_v33, %v589_v36  ;;  %v119_v42 = vsub.s32 %v116_v35, %v589_v36  ;;  %v319_v35 = vsub.s32 0, %v589_v36 }
  0x15   :  { %67 = vadd.xlane.f32.xlu1 %v66_v10  ;;  %418 = vmatpush3.msra.mxu0 %v87_v25  ;;  %v126_v51 = vsub.s32 %v123_v40, %v589_v36 }
  0x16   :  { %55 = vadd.xlane.f32.xlu0 %v54_v11  ;;  %419 = vmatprep.subr.mxu0 %v490_v24 }
  0x17   :  { %420 = vmatpush3.msra.mxu0 %v86_v26 }
  0x18   :  { %421 = vmatprep.subr.mxu0 %v490_v24 }
  0x19   :  { %70 = vadd.xlane.f32.xlu1 %v69_v16  ;;  %422 = vmatpush3.msra.mxu0 %v85_v27 }
  0x1a   :  { %58 = vadd.xlane.f32.xlu0 %v57_v17  ;;  %423 = vmatprep.subr.mxu0 %v490_v24 }
  0x1b   :  { %424 = vmatpush3.msra.mxu0 %v84_v28  ;;  %v406_v28 = vld [vmem:[%s632_s4] ss:$0 sm:$0xff] }
  0x1d   :  { %73 = vadd.xlane.f32.xlu1 %v72_v22  ;;  %v225_v22 = vld [vmem:[%s631_s3] sm:$0x3] }
  0x1e   :  { %61 = vadd.xlane.f32.xlu0 %v60_v23  ;;  %429 = vmatpush3.msk.msra.mxu1 %vm237_vm6, %v225_v22  ;;  %v404_v23 = vld [vmem:[%s630_s2] ss:$0 sm:$0xff]  ;;  %s492_s2 = smov [#allocation5]  }
  0x1f   :  { %s392_s3 = sshll.u32 %s492_s2, 4  ;;  %s393_s3 = int_to_ptr.vmem [resolvable:$true] %s392_s3 }
  0x20   :  { %s463_s4 = scalar_lea.vmem %s393_s3, 2048  ;;  %p468_p6 = scmp.lt.s32.totalorder %s393_s3, %s393_s3 }
  0x21   :  { %p464_p5 = scmp.ne.s32.totalorder %s393_s3, %s463_s4  ;;  %p469_p7 = scmp.lt.s32.totalorder %s463_s4, %s463_s4 }
  0x23   :  { %p470_p8 = por %p469_p7, %p468_p6 }
  0x25   :  { %p471_p9 = pnand %p470_p8, %p464_p5 }
  0x9a   :  { %v65_v30 = vpop.xlane.xlu1 %64 }
  0x9b   :  { %v53_v32 = vpop.xlane.xlu0 %52  ;;  %v80_v45 = vmul.f32 0.00390625, %v65_v30 }
  0x9c   :  { %v76_v48 = vmul.f32 0.00390625, %v53_v32 }
  0x9d   :  { %v133_v55 = vrot.slane %v80_v45, %v107_v44 }
  0x9e   :  { %v68_v34 = vpop.xlane.xlu1 %67  ;;  %v108_v59 = vrot.slane %v76_v48, %v107_v44 }
  0x9f   :  { %v56_v37 = vpop.xlane.xlu0 %55  ;;  %v81_v39 = vmul.f32 0.00390625, %v68_v34 }
  0xa0   :  { %v77_v41 = vmul.f32 0.00390625, %v56_v37 }
  0xa1   :  { %v137_v50 = vrot.slane %v81_v39, %v112_v38  ;;  %v338_v39 = vsub.s32 1, %v589_v36 }
  0xa2   :  { %v71_v43 = vpop.xlane.xlu1 %70  ;;  %v113_v52 = vrot.slane %v77_v41, %v112_v38 }
  0xa3   :  { %v82_v46 = vmul.f32 0.00390625, %v71_v43  ;;  %v59_v47 = vpop.xlane.xlu0 %58  ;;  %v138_v61 = vsel %vm114_vm1, %v137_v50, %v133_v55 }
  0xa4   :  { %v78_v49 = vmul.f32 0.00390625, %v59_v47  ;;  %v115_v63 = vsel %vm114_vm1, %v113_v52, %v108_v59 }
  0xa5   :  { %v142_v53 = vrot.slane %v82_v46, %v119_v42 }
  0xa6   :  { %v74_v54 = vpop.xlane.xlu1 %73  ;;  %v120_v56 = vrot.slane %v78_v49, %v119_v42 }
  0xa7   :  { %v83_v57 = vmul.f32 0.00390625, %v74_v54  ;;  %v62_v58 = vpop.xlane.xlu0 %61  ;;  %v143_v3 = vsel %vm121_vm2, %v142_v53, %v138_v61 }
  0xa8   :  { %v79_v60 = vmul.f32 0.00390625, %v62_v58  ;;  %v122_v10 = vsel %vm121_vm2, %v120_v56, %v115_v63 }
  0xa9   :  { %v147_v62 = vrot.slane %v83_v57, %v126_v51 }
  0xaa   :  { %v127_v7 = vrot.slane %v79_v60, %v126_v51 }
  0xab   :  { %v148_v11 = vsel %vm128_vm3, %v147_v62, %v143_v3 }
  0xac   :  { %v129_v16 = vsel %vm128_vm3, %v127_v7, %v122_v10 }
  0xad   :  { %v150_v17 = vsel %vm149_vm4, %v148_v11, %v129_v16 }
  0xae   :  { %426 = vmatmul.mubr.msk.f32.vlgmr.msra.gmra.mxu0 %vm151_vm5, %v150_v17 }
 0x16e   :  { %v220_v24 = vpop.f32.mrf.mxu0 }
 0x16f   :  { %v221_v25 = vadd.f32 %v404_v23, %v220_v24 }
 0x170   :  { %v427_v26 = vpop.f32.mrf.mxu0 }
 0x171   :  { %v224_v27 = vmax.f32 %v221_v25, 0.0 }
 0x173   :  { %431 = vmatmul.mubr.msk.f32.vlgmr.msra.gmra.mxu1 %vm233_vm7, %v224_v27 }
 0x233   :  { %v307_v29 = vpop.f32.mrf.mxu1 }
 0x234   :  { %v308_v30 = vadd.f32 %v406_v28, %v307_v29 }
 0x235   :  { %v432_v31 = vpop.f32.mrf.mxu1 }
 0x236   :  { %v409_v32 = vmul.f32 -1.442695, %v308_v30 }
 0x238   :  { %439 = vpow2.f32 %v409_v32 }
 0x245   :  { %v440_v33 = vpop.eup %439 }
 0x246   :  { %v314_v34 = vadd.f32 1.0, %v440_v33 }
 0x248   :  { %441 = vrcp.f32 %v314_v34 }
 0x255   :  { %v442_v37 = vpop.eup %441 }
 0x256   :  { %v320_v38 = vrot.slane %v442_v37, %v319_v35  ;;  %v339_v40 = vrot.slane %v442_v37, %v338_v39 }
 0x258   :  { %326 = vbcast.lane.b32.xlu1 %v320_v38, 264  ;;  %322 = vbcast.lane.b32.xlu0 %v320_v38, 256 }
 0x25c   :  { %330 = vbcast.lane.b32.xlu1 %v320_v38, 272  ;;  %341 = vbcast.lane.b32.xlu0 %v339_v40, 256 }
 0x260   :  { %334 = vbcast.lane.b32.xlu1 %v320_v38, 280  ;;  %349 = vbcast.lane.b32.xlu0 %v339_v40, 272 }
 0x264   :  { %345 = vbcast.lane.b32.xlu1 %v339_v40, 264 }
 0x268   :  { %353 = vbcast.lane.b32.xlu1 %v339_v40, 280 }
 0x2ca   :  { %v327_v41 = vpop.permute.xlu1 %326  ;;  %v323_v42 = vpop.permute.xlu0 %322 }
 0x2cb   :  { %v357_v43 = vmul.f32 %v327_v41, %v545_v8  ;;  %v358_v44 = vmul.f32 %v327_v41, %v547_v9  ;;  %v355_v45 = vmul.f32 %v323_v42, %v533_v2  ;;  %v356_v46 = vmul.f32 %v323_v42, %v537_v4 }
 0x2cd   :  { %373 = vst [vmem:[#allocation5 + $0x10] sm:$0xff] %v357_v43  ;;  %374 = vst [vmem:[#allocation5 + $0x18] sm:$0xff] %v358_v44 }
 0x2ce   :  { %371 = vst [vmem:[#allocation5] sm:$0xff] %v355_v45  ;;  %372 = vst [vmem:[#allocation5 + $0x8] sm:$0xff] %v356_v46  ;;  %v331_v36 = vpop.permute.xlu1 %330  ;;  %v342_v47 = vpop.permute.xlu0 %341 }
 0x2cf   :  { %v359_v48 = vmul.f32 %v331_v36, %v557_v14  ;;  %v360_v49 = vmul.f32 %v331_v36, %v559_v15  ;;  %v363_v50 = vmul.f32 %v342_v47, %v529_v0  ;;  %v364_v8 = vmul.f32 %v342_v47, %v531_v1 }
 0x2d1   :  { %375 = vst [vmem:[#allocation5 + $0x20] sm:$0xff] %v359_v48  ;;  %376 = vst [vmem:[#allocation5 + $0x28] sm:$0xff] %v360_v49 }
 0x2d2   :  { %379 = vst [vmem:[#allocation5 + $0x40] sm:$0xff] %v363_v50  ;;  %380 = vst [vmem:[#allocation5 + $0x48] sm:$0xff] %v364_v8  ;;  %v335_v2 = vpop.permute.xlu1 %334  ;;  %v350_v4 = vpop.permute.xlu0 %349 }
 0x2d3   :  { %v361_v9 = vmul.f32 %v335_v2, %v569_v20  ;;  %v362_v51 = vmul.f32 %v335_v2, %v571_v21  ;;  %v367_v52 = vmul.f32 %v350_v4, %v553_v12  ;;  %v368_v14 = vmul.f32 %v350_v4, %v555_v13 }
 0x2d5   :  { %377 = vst [vmem:[#allocation5 + $0x30] sm:$0xff] %v361_v9  ;;  %378 = vst [vmem:[#allocation5 + $0x38] sm:$0xff] %v362_v51 }
 0x2d6   :  { %383 = vst [vmem:[#allocation5 + $0x60] sm:$0xff] %v367_v52  ;;  %384 = vst [vmem:[#allocation5 + $0x68] sm:$0xff] %v368_v14  ;;  %v346_v0 = vpop.permute.xlu1 %345 }
 0x2d7   :  { %v365_v1 = vmul.f32 %v346_v0, %v539_v5  ;;  %v366_v15 = vmul.f32 %v346_v0, %v541_v6 }
 0x2d9   :  { %381 = vst [vmem:[#allocation5 + $0x50] sm:$0xff] %v365_v1  ;;  %382 = vst [vmem:[#allocation5 + $0x58] sm:$0xff] %v366_v15 }
 0x2da   :  { %v354_v20 = vpop.permute.xlu1 %353 }
 0x2db   :  { %v369_v21 = vmul.f32 %v354_v20, %v565_v18  ;;  %v370_v12 = vmul.f32 %v354_v20, %v567_v19 }
 0x2dd   :  { %385 = vst [vmem:[#allocation5 + $0x70] sm:$0xff] %v369_v21  ;;  %386 = vst [vmem:[#allocation5 + $0x78] sm:$0xff] %v370_v12 }
 0x2de   :  { %474 = shalt.err (!%p471_p9)
}
 0x2df   :  { %398 = dma.vmem_to_hbm [thread:$0]  %s393_s3, 2048, %s633_s5, [#allocation4], %s488_s21, %s488_s21, %s489_s22  }
 0x2e0   :  { %485 = dma.done.wait [#allocation4], 2048  }
 0x2e1   :  { %486 = vsyncadd [#allocation4], 4294965248 }
 0x2e2   :  { %402 = vsyncpa [#allocation3], 1 }
 0x2e3   :  { %403 = vsyncpa [#allocation4], 1 }

</bundles_post_ra>
